<compile_context>
chip_gen: v7x
topology: tpu7x:2x2x1
jax: 0.10.0
libtpu: 0.0.40
codegen_flags: <defaults>
</compile_context>

<pallas_src>
import functools

import jax
import jax.numpy as jnp
from jax import lax
from jax.experimental import pallas as pl
from jax.experimental.pallas import tpu as pltpu

LN_EPS = 1e-5
NEG_BIG = -1e30  # causal-mask fill; exp underflows to exactly 0 (same as -inf)


# ----------------------------------------------------------------------------
# helpers (used both inside the kernel and in the pure-JAX reference)
# ----------------------------------------------------------------------------
def _layernorm(x, gamma, beta):
    mean = jnp.mean(x, axis=-1, keepdims=True)
    var = jnp.mean((x - mean) ** 2, axis=-1, keepdims=True)
    return (x - mean) * lax.rsqrt(var + LN_EPS) * gamma + beta


# ----------------------------------------------------------------------------
# fused Block kernel: one grid point per batch element
# ----------------------------------------------------------------------------
def block_kernel(x_ref, ln1g_ref, ln1b_ref, wqkv_ref, pw_ref, pb_ref,
                 ln2g_ref, ln2b_ref, rw_ref, rb_ref,
                 w1_ref, b1_ref, w2_ref, b2_ref, o_ref,
                 *, n_head, head_size, num_experts, inv_temperature, threshold):
    T, C = x_ref.shape
    hs = head_size
    hid = w1_ref.shape[1] // num_experts          # 4*C

    x = x_ref[...]                                # (T, C) f32

    # ---------------- attention sub-block: x = x + proj(MHA(LN1(x))) --------
    xn = _layernorm(x, ln1g_ref[...], ln1b_ref[...])
    xn_bf = xn.astype(jnp.bfloat16)
    # fused QKV projection: (T, C) @ (C, 3C) -> (T, 3C)
    qkv = jnp.dot(xn_bf, wqkv_ref[...], preferred_element_type=jnp.float32)

    # causal mask built once (hoisted out of the head loop)
    row = lax.broadcasted_iota(jnp.int32, (T, T), 0)
    col = lax.broadcasted_iota(jnp.int32, (T, T), 1)
    causal = col <= row
    scale = hs ** -0.5

    heads = []
    for h in range(n_head):                       # static loop; tiny (T,hs) tiles
        q = qkv[:, h * hs:(h + 1) * hs]
        k = qkv[:, C + h * hs:C + (h + 1) * hs]
        v = qkv[:, 2 * C + h * hs:2 * C + (h + 1) * hs]
        s = jnp.dot(q, k.T, preferred_element_type=jnp.float32) * scale
        s = jnp.where(causal, s, NEG_BIG)
        m = jnp.max(s, axis=-1, keepdims=True)
        e = jnp.exp(s - m)
        w = e * pl.reciprocal(jnp.sum(e, axis=-1, keepdims=True), approx=True)
        heads.append(jnp.dot(w, v, preferred_element_type=jnp.float32))
    att = jnp.concatenate(heads, axis=-1)         # (T, C) == concat of head outs
    # single output projection with K = C (instead of n_head K=hs matmuls)
    x = x + jnp.dot(att.astype(jnp.bfloat16), pw_ref[...],
                    preferred_element_type=jnp.float32) + pb_ref[...]

    # ---------------- MoE sub-block: x = x + sum_e gate_e * Expert_e(LN2(x)) -
    xn2 = _layernorm(x, ln2g_ref[...], ln2b_ref[...])
    xn2_bf = xn2.astype(jnp.bfloat16)
    logits = (jnp.dot(xn2_bf, rw_ref[...], preferred_element_type=jnp.float32)
              + rb_ref[...]) * inv_temperature
    m = jnp.max(logits, axis=-1, keepdims=True)
    e = jnp.exp(logits - m)
    gate = e * pl.reciprocal(jnp.sum(e, axis=-1, keepdims=True), approx=True)
    gate = jnp.where(gate > threshold, gate, 0.0)            # (T, E)

    # all experts' up-projections in one lane-dense matmul: (T, C) @ (C, E*4C)
    h1 = jnp.maximum(
        jnp.dot(xn2_bf, w1_ref[...], preferred_element_type=jnp.float32)
        + b1_ref[...], 0.0)                                  # (T, E*4C)
    # fold gating onto the hidden slab so the down-projection is one matmul:
    #   sum_e gate_e * (h1_e @ w2_e) == concat_e(gate_e * h1_e) @ stack_e(w2_e)
    gated = [h1[:, ei * hid:(ei + 1) * hid] * gate[:, ei:ei + 1]
             for ei in range(num_experts)]
    h1g = jnp.concatenate(gated, axis=-1)                    # (T, E*4C)
    moe = jnp.dot(h1g.astype(jnp.bfloat16), w2_ref[...],
                  preferred_element_type=jnp.float32)        # (T, C), K = E*4C
    moe = moe + jnp.dot(gate, b2_ref[...],
                        preferred_element_type=jnp.float32)  # sum_e gate_e * b2_e
    o_ref[...] = x + moe


# ----------------------------------------------------------------------------
# pallas_call wrapper
# ----------------------------------------------------------------------------
def _const_spec(arr):
    nd = arr.ndim
    return pl.BlockSpec(arr.shape, lambda b, _nd=nd: (0,) * _nd)


def block_forward(x, p, *, n_head, head_size, num_experts, temperature, threshold):
    """Block.forward(x): x + MHA(LN1(x)) then + SparseMoE(LN2(x))."""
    B, T, C = x.shape
    E = num_experts
    hid = 4 * C

    # ---- fuse weights into MXU-friendly, lane-dense layouts (cheap XLA glue) ----
    wq = jnp.swapaxes(p['wq'], 0, 1).reshape(C, C)           # (C, n_head*hs)
    wk = jnp.swapaxes(p['wk'], 0, 1).reshape(C, C)
    wv = jnp.swapaxes(p['wv'], 0, 1).reshape(C, C)
    wqkv = jnp.concatenate([wq, wk, wv], axis=1).astype(jnp.bfloat16)   # (C, 3C)
    pw = p['pw'].astype(jnp.bfloat16)                                    # (C, C)
    rw = p['rw'].astype(jnp.bfloat16)                                    # (C, E)
    w1 = jnp.swapaxes(p['w1'], 0, 1).reshape(C, E * hid).astype(jnp.bfloat16)
    b1 = p['b1'].reshape(1, E * hid)
    w2 = p['w2'].reshape(E * hid, C).astype(jnp.bfloat16)
    b2 = p['b2'].reshape(E, C)

    kern = functools.partial(block_kernel, n_head=n_head, head_size=head_size,
                             num_experts=E, inv_temperature=1.0 / temperature,
                             threshold=threshold)
    args = (p['ln1_g'], p['ln1_b'], wqkv, pw, p['pb'],
            p['ln2_g'], p['ln2_b'], rw, p['rb'], w1, b1, w2, b2)
    return pl.pallas_call(
        kern,
        out_shape=jax.ShapeDtypeStruct((B, T, C), jnp.float32),
        grid=(B,),
        in_specs=[pl.BlockSpec((None, T, C), lambda b: (b, 0, 0))]
                 + [_const_spec(a) for a in args],
        out_specs=pl.BlockSpec((None, T, C), lambda b: (b, 0, 0)),
        compiler_params=pltpu.CompilerParams(dimension_semantics=("parallel",)),
    )(x, *args)


# ----------------------------------------------------------------------------
# pure-JAX reference (mirrors the PyTorch Block, f32 throughout)
# ----------------------------------------------------------------------------
def ref_block(x, p, *, n_head, head_size, num_experts, temperature, threshold):
    B, T, C = x.shape
    xn = _layernorm(x, p['ln1_g'], p['ln1_b'])
    mask = jnp.tril(jnp.ones((T, T), bool))
    heads = []
    for h in range(n_head):
        q = xn @ p['wq'][h]; k = xn @ p['wk'][h]; v = xn @ p['wv'][h]
        s = jnp.einsum('btd,bsd->bts', q, k) * head_size ** -0.5
        s = jnp.where(mask, s, -jnp.inf)
        heads.append(jnp.einsum('bts,bsd->btd', jax.nn.softmax(s, axis=-1), v))
    att = jnp.concatenate(heads, axis=-1)
    x = x + att @ p['pw'] + p['pb']
    xn2 = _layernorm(x, p['ln2_g'], p['ln2_b'])
    gate = jax.nn.softmax((xn2 @ p['rw'] + p['rb']) / temperature, axis=-1)
    gate = jnp.where(gate > threshold, gate, 0.0)
    acc = jnp.zeros_like(x)
    for e in range(num_experts):
        h1 = jnp.maximum(xn2 @ p['w1'][e] + p['b1'][e], 0.0)
        acc = acc + (h1 @ p['w2'][e] + p['b2'][e]) * gate[..., e:e + 1]
    return x + acc


# ----------------------------------------------------------------------------
# deterministic parameter init (weights stored as (in, out), transpose of torch)
# ----------------------------------------------------------------------------
def init_params(key, *, n_embed, n_head, num_experts):
    hs = n_embed // n_head
    hid = 4 * n_embed
    ks = iter(jax.random.split(key, 20))

    def nrm(shape, scale=0.02):
        return (scale * jax.random.normal(next(ks), shape)).astype(jnp.float32)

    return {
        'ln1_g': jnp.ones((1, n_embed), jnp.float32),
        'ln1_b': jnp.zeros((1, n_embed), jnp.float32),
        'wq': nrm((n_head, n_embed, hs)),
        'wk': nrm((n_head, n_embed, hs)),
        'wv': nrm((n_head, n_embed, hs)),
        'pw': nrm((n_embed, n_embed)),
        'pb': nrm((1, n_embed)),
        'ln2_g': jnp.ones((1, n_embed), jnp.float32),
        'ln2_b': jnp.zeros((1, n_embed), jnp.float32),
        'rw': nrm((n_embed, num_experts)),
        'rb': nrm((1, num_experts)),
        'w1': nrm((num_experts, n_embed, hid)),
        'b1': nrm((num_experts, 1, hid)),
        'w2': nrm((num_experts, hid, n_embed)),
        'b2': nrm((num_experts, 1, n_embed)),
    }


# ----------------------------------------------------------------------------
if __name__ == "__main__":
    # small config consistent with Block.__init__
    n_embed = 32
    n_head = 4
    num_experts = 4
    block_size = 8
    dropout = 0.0                  # identity (eval)
    router_temperature = 1.0       # router_alpha=1.5 -> softmax fallback (no entmax)
    activation_threshold = 1e-9
    head_size = n_embed // n_head

    B, T = 2, block_size
    root = jax.random.PRNGKey(0)
    kp, kx = jax.random.split(root)
    params = init_params(kp, n_embed=n_embed, n_head=n_head, num_experts=num_experts)
    x = jax.random.normal(kx, (B, T, n_embed), dtype=jnp.float32)

    fwd = jax.jit(functools.partial(
        block_forward, n_head=n_head, head_size=head_size,
        num_experts=num_experts, temperature=router_temperature,
        threshold=activation_threshold))
    out = jax.block_until_ready(fwd(x, params))          # (B, T, C)

    ref = ref_block(x, params, n_head=n_head, head_size=head_size,
                    num_experts=num_experts, temperature=router_temperature,
                    threshold=activation_threshold)

    assert out.shape == (B, T, n_embed)
    # tolerance loosened slightly vs pure-f32 because MXU operands are bf16
    # (accumulation stays f32) and softmax uses the EUP approx reciprocal.
    assert jnp.allclose(out, ref, atol=2e-2, rtol=2e-2), "mismatch vs JAX reference"

    print("KERNEL_OK")
</pallas_src>

<mosaic_0001>
module attributes {stable_mosaic.version = 11 : i64} {
  func.func @block_kernel(%arg0: i32, %arg1: memref<1x8x32xf32, #tpu.memory_space<vmem>>, %arg2: memref<1x32xf32, #tpu.memory_space<vmem>>, %arg3: memref<1x32xf32, #tpu.memory_space<vmem>>, %arg4: memref<32x96xbf16, #tpu.memory_space<vmem>>, %arg5: memref<32x32xbf16, #tpu.memory_space<vmem>>, %arg6: memref<1x32xf32, #tpu.memory_space<vmem>>, %arg7: memref<1x32xf32, #tpu.memory_space<vmem>>, %arg8: memref<1x32xf32, #tpu.memory_space<vmem>>, %arg9: memref<32x4xbf16, #tpu.memory_space<vmem>>, %arg10: memref<1x4xf32, #tpu.memory_space<vmem>>, %arg11: memref<32x512xbf16, #tpu.memory_space<vmem>>, %arg12: memref<1x512xf32, #tpu.memory_space<vmem>>, %arg13: memref<512x32xbf16, #tpu.memory_space<vmem>>, %arg14: memref<4x32xf32, #tpu.memory_space<vmem>>, %arg15: memref<1x8x32xf32, #tpu.memory_space<vmem>>) attributes {dimension_semantics = [#tpu.dimension_semantics<parallel>], iteration_bounds = array<i64: 2>, scalar_prefetch = 0 : i64, scratch_operands = 0 : i64, tpu.core_type = #tpu.core_type<tc>, window_params = [{transform_indices = @transform_0, window_bounds = array<i64: 1, 8, 32>}, {pipeline_mode = #tpu.pipeline_mode<synchronous>, transform_indices = @transform_1, window_bounds = array<i64: 1, 32>}, {pipeline_mode = #tpu.pipeline_mode<synchronous>, transform_indices = @transform_2, window_bounds = array<i64: 1, 32>}, {pipeline_mode = #tpu.pipeline_mode<synchronous>, transform_indices = @transform_3, window_bounds = array<i64: 32, 96>}, {pipeline_mode = #tpu.pipeline_mode<synchronous>, transform_indices = @transform_4, window_bounds = array<i64: 32, 32>}, {pipeline_mode = #tpu.pipeline_mode<synchronous>, transform_indices = @transform_5, window_bounds = array<i64: 1, 32>}, {pipeline_mode = #tpu.pipeline_mode<synchronous>, transform_indices = @transform_6, window_bounds = array<i64: 1, 32>}, {pipeline_mode = #tpu.pipeline_mode<synchronous>, transform_indices = @transform_7, window_bounds = array<i64: 1, 32>}, {pipeline_mode = #tpu.pipeline_mode<synchronous>, transform_indices = @transform_8, window_bounds = array<i64: 32, 4>}, {pipeline_mode = #tpu.pipeline_mode<synchronous>, transform_indices = @transform_9, window_bounds = array<i64: 1, 4>}, {pipeline_mode = #tpu.pipeline_mode<synchronous>, transform_indices = @transform_10, window_bounds = array<i64: 32, 512>}, {pipeline_mode = #tpu.pipeline_mode<synchronous>, transform_indices = @transform_11, window_bounds = array<i64: 1, 512>}, {pipeline_mode = #tpu.pipeline_mode<synchronous>, transform_indices = @transform_12, window_bounds = array<i64: 512, 32>}, {pipeline_mode = #tpu.pipeline_mode<synchronous>, transform_indices = @transform_13, window_bounds = array<i64: 4, 32>}, {transform_indices = @transform_14, window_bounds = array<i64: 1, 8, 32>}]} {
    %c0 = arith.constant 0 : index
    %c0_0 = arith.constant 0 : index
    %c0_1 = arith.constant 0 : index
    %0 = vector.load %arg1[%c0, %c0_0, %c0_1] : memref<1x8x32xf32, #tpu.memory_space<vmem>>, vector<1x8x32xf32>
    %1 = vector.shape_cast %0 : vector<1x8x32xf32> to vector<8x32xf32>
    %c0_2 = arith.constant 0 : index
    %c0_3 = arith.constant 0 : index
    %2 = vector.load %arg2[%c0_2, %c0_3] : memref<1x32xf32, #tpu.memory_space<vmem>>, vector<1x32xf32>
    %c0_4 = arith.constant 0 : index
    %c0_5 = arith.constant 0 : index
    %3 = vector.load %arg3[%c0_4, %c0_5] : memref<1x32xf32, #tpu.memory_space<vmem>>, vector<1x32xf32>
    %cst = arith.constant dense<0.000000e+00> : vector<8xf32>
    %4 = vector.multi_reduction <add>, %1, %cst [1] : vector<8x32xf32> to vector<8xf32>
    %5 = vector.shape_cast %4 : vector<8xf32> to vector<8x1xf32>
    %cst_6 = arith.constant 3.200000e+01 : f32
    %6 = vector.broadcast %cst_6 : f32 to vector<8x1xf32>
    %7 = arith.divf %5, %6 : vector<8x1xf32>
    %8 = vector.broadcast %7 : vector<8x1xf32> to vector<8x32xf32>
    %9 = arith.subf %1, %8 : vector<8x32xf32>
    %10 = arith.mulf %9, %9 : vector<8x32xf32>
    %cst_7 = arith.constant dense<0.000000e+00> : vector<8xf32>
    %11 = vector.multi_reduction <add>, %10, %cst_7 [1] : vector<8x32xf32> to vector<8xf32>
    %12 = vector.shape_cast %11 : vector<8xf32> to vector<8x1xf32>
    %cst_8 = arith.constant 3.200000e+01 : f32
    %13 = vector.broadcast %cst_8 : f32 to vector<8x1xf32>
    %14 = arith.divf %12, %13 : vector<8x1xf32>
    %15 = vector.broadcast %7 : vector<8x1xf32> to vector<8x32xf32>
    %16 = arith.subf %1, %15 : vector<8x32xf32>
    %cst_9 = arith.constant 9.99999974E-6 : f32
    %17 = vector.broadcast %cst_9 : f32 to vector<8x1xf32>
    %18 = arith.addf %14, %17 : vector<8x1xf32>
    %19 = math.rsqrt %18 : vector<8x1xf32>
    %20 = vector.broadcast %19 : vector<8x1xf32> to vector<8x32xf32>
    %21 = arith.mulf %16, %20 : vector<8x32xf32>
    %22 = vector.broadcast %2 : vector<1x32xf32> to vector<8x32xf32>
    %23 = arith.mulf %21, %22 : vector<8x32xf32>
    %24 = vector.broadcast %3 : vector<1x32xf32> to vector<8x32xf32>
    %25 = arith.addf %23, %24 : vector<8x32xf32>
    %26 = arith.truncf %25 : vector<8x32xf32> to vector<8x32xbf16>
    %c0_10 = arith.constant 0 : index
    %c0_11 = arith.constant 0 : index
    %27 = vector.load %arg4[%c0_10, %c0_11] : memref<32x96xbf16, #tpu.memory_space<vmem>>, vector<32x96xbf16>
    %cst_12 = arith.constant dense<0.000000e+00> : vector<8x96xf32>
    %28 = tpu.matmul %26, %27, %cst_12 {dimension_numbers = #tpu.dot_dimension_numbers<[1], [0], [0], [1], [0, 0, 1, 1], [], []>} : vector<8x32xbf16>, vector<32x96xbf16>, vector<8x96xf32> -> vector<8x96xf32>
    %29 = tpu.iota {dimensions = array<i32: 0>} : vector<8x8xi32>
    %30 = tpu.iota {dimensions = array<i32: 1>} : vector<8x8xi32>
    %31 = arith.cmpi sle, %30, %29 : vector<8x8xi32>
    %32 = vector.extract_strided_slice %28 {offsets = [0, 0], sizes = [8, 8], strides = [1, 1]} : vector<8x96xf32> to vector<8x8xf32>
    %33 = vector.extract_strided_slice %28 {offsets = [0, 32], sizes = [8, 8], strides = [1, 1]} : vector<8x96xf32> to vector<8x8xf32>
    %34 = vector.extract_strided_slice %28 {offsets = [0, 64], sizes = [8, 8], strides = [1, 1]} : vector<8x96xf32> to vector<8x8xf32>
    %35 = tpu.transpose %33, [1, 0] : vector<8x8xf32> -> vector<8x8xf32>
    %cst_13 = arith.constant dense<0.000000e+00> : vector<8x8xf32>
    %36 = tpu.matmul %32, %35, %cst_13 {dimension_numbers = #tpu.dot_dimension_numbers<[1], [0], [0], [1], [0, 0, 1, 1], [], []>} : vector<8x8xf32>, vector<8x8xf32>, vector<8x8xf32> -> vector<8x8xf32>
    %cst_14 = arith.constant 0.353553385 : f32
    %37 = vector.broadcast %cst_14 : f32 to vector<8x8xf32>
    %38 = arith.mulf %36, %37 : vector<8x8xf32>
    %cst_15 = arith.constant -1.000000e+30 : f32
    %39 = vector.broadcast %cst_15 : f32 to vector<8x8xf32>
    %40 = arith.select %31, %38, %39 : vector<8x8xi1>, vector<8x8xf32>
    %cst_16 = arith.constant dense<0xFF800000> : vector<8xf32>
    %41 = vector.multi_reduction <maximumf>, %40, %cst_16 [1] : vector<8x8xf32> to vector<8xf32>
    %42 = vector.shape_cast %41 : vector<8xf32> to vector<8x1xf32>
    %43 = vector.broadcast %42 : vector<8x1xf32> to vector<8x8xf32>
    %44 = arith.subf %40, %43 : vector<8x8xf32>
    %45 = math.exp %44 : vector<8x8xf32>
    %cst_17 = arith.constant dense<0.000000e+00> : vector<8xf32>
    %46 = vector.multi_reduction <add>, %45, %cst_17 [1] : vector<8x8xf32> to vector<8xf32>
    %47 = vector.shape_cast %46 : vector<8xf32> to vector<8x1xf32>
    %48 = tpu.reciprocal %47 {approx = true} : vector<8x1xf32> -> vector<8x1xf32>
    %49 = vector.broadcast %48 : vector<8x1xf32> to vector<8x8xf32>
    %50 = arith.mulf %45, %49 : vector<8x8xf32>
    %cst_18 = arith.constant dense<0.000000e+00> : vector<8x8xf32>
    %51 = tpu.matmul %50, %34, %cst_18 {dimension_numbers = #tpu.dot_dimension_numbers<[1], [0], [0], [1], [0, 0, 1, 1], [], []>} : vector<8x8xf32>, vector<8x8xf32>, vector<8x8xf32> -> vector<8x8xf32>
    %52 = vector.extract_strided_slice %28 {offsets = [0, 8], sizes = [8, 8], strides = [1, 1]} : vector<8x96xf32> to vector<8x8xf32>
    %53 = vector.extract_strided_slice %28 {offsets = [0, 40], sizes = [8, 8], strides = [1, 1]} : vector<8x96xf32> to vector<8x8xf32>
    %54 = vector.extract_strided_slice %28 {offsets = [0, 72], sizes = [8, 8], strides = [1, 1]} : vector<8x96xf32> to vector<8x8xf32>
    %55 = tpu.transpose %53, [1, 0] : vector<8x8xf32> -> vector<8x8xf32>
    %cst_19 = arith.constant dense<0.000000e+00> : vector<8x8xf32>
    %56 = tpu.matmul %52, %55, %cst_19 {dimension_numbers = #tpu.dot_dimension_numbers<[1], [0], [0], [1], [0, 0, 1, 1], [], []>} : vector<8x8xf32>, vector<8x8xf32>, vector<8x8xf32> -> vector<8x8xf32>
    %cst_20 = arith.constant 0.353553385 : f32
    %57 = vector.broadcast %cst_20 : f32 to vector<8x8xf32>
    %58 = arith.mulf %56, %57 : vector<8x8xf32>
    %cst_21 = arith.constant -1.000000e+30 : f32
    %59 = vector.broadcast %cst_21 : f32 to vector<8x8xf32>
    %60 = arith.select %31, %58, %59 : vector<8x8xi1>, vector<8x8xf32>
    %cst_22 = arith.constant dense<0xFF800000> : vector<8xf32>
    %61 = vector.multi_reduction <maximumf>, %60, %cst_22 [1] : vector<8x8xf32> to vector<8xf32>
    %62 = vector.shape_cast %61 : vector<8xf32> to vector<8x1xf32>
    %63 = vector.broadcast %62 : vector<8x1xf32> to vector<8x8xf32>
    %64 = arith.subf %60, %63 : vector<8x8xf32>
    %65 = math.exp %64 : vector<8x8xf32>
    %cst_23 = arith.constant dense<0.000000e+00> : vector<8xf32>
    %66 = vector.multi_reduction <add>, %65, %cst_23 [1] : vector<8x8xf32> to vector<8xf32>
    %67 = vector.shape_cast %66 : vector<8xf32> to vector<8x1xf32>
    %68 = tpu.reciprocal %67 {approx = true} : vector<8x1xf32> -> vector<8x1xf32>
    %69 = vector.broadcast %68 : vector<8x1xf32> to vector<8x8xf32>
    %70 = arith.mulf %65, %69 : vector<8x8xf32>
    %cst_24 = arith.constant dense<0.000000e+00> : vector<8x8xf32>
    %71 = tpu.matmul %70, %54, %cst_24 {dimension_numbers = #tpu.dot_dimension_numbers<[1], [0], [0], [1], [0, 0, 1, 1], [], []>} : vector<8x8xf32>, vector<8x8xf32>, vector<8x8xf32> -> vector<8x8xf32>
    %72 = vector.extract_strided_slice %28 {offsets = [0, 16], sizes = [8, 8], strides = [1, 1]} : vector<8x96xf32> to vector<8x8xf32>
    %73 = vector.extract_strided_slice %28 {offsets = [0, 48], sizes = [8, 8], strides = [1, 1]} : vector<8x96xf32> to vector<8x8xf32>
    %74 = vector.extract_strided_slice %28 {offsets = [0, 80], sizes = [8, 8], strides = [1, 1]} : vector<8x96xf32> to vector<8x8xf32>
    %75 = tpu.transpose %73, [1, 0] : vector<8x8xf32> -> vector<8x8xf32>
    %cst_25 = arith.constant dense<0.000000e+00> : vector<8x8xf32>
    %76 = tpu.matmul %72, %75, %cst_25 {dimension_numbers = #tpu.dot_dimension_numbers<[1], [0], [0], [1], [0, 0, 1, 1], [], []>} : vector<8x8xf32>, vector<8x8xf32>, vector<8x8xf32> -> vector<8x8xf32>
    %cst_26 = arith.constant 0.353553385 : f32
    %77 = vector.broadcast %cst_26 : f32 to vector<8x8xf32>
    %78 = arith.mulf %76, %77 : vector<8x8xf32>
    %cst_27 = arith.constant -1.000000e+30 : f32
    %79 = vector.broadcast %cst_27 : f32 to vector<8x8xf32>
    %80 = arith.select %31, %78, %79 : vector<8x8xi1>, vector<8x8xf32>
    %cst_28 = arith.constant dense<0xFF800000> : vector<8xf32>
    %81 = vector.multi_reduction <maximumf>, %80, %cst_28 [1] : vector<8x8xf32> to vector<8xf32>
    %82 = vector.shape_cast %81 : vector<8xf32> to vector<8x1xf32>
    %83 = vector.broadcast %82 : vector<8x1xf32> to vector<8x8xf32>
    %84 = arith.subf %80, %83 : vector<8x8xf32>
    %85 = math.exp %84 : vector<8x8xf32>
    %cst_29 = arith.constant dense<0.000000e+00> : vector<8xf32>
    %86 = vector.multi_reduction <add>, %85, %cst_29 [1] : vector<8x8xf32> to vector<8xf32>
    %87 = vector.shape_cast %86 : vector<8xf32> to vector<8x1xf32>
    %88 = tpu.reciprocal %87 {approx = true} : vector<8x1xf32> -> vector<8x1xf32>
    %89 = vector.broadcast %88 : vector<8x1xf32> to vector<8x8xf32>
    %90 = arith.mulf %85, %89 : vector<8x8xf32>
    %cst_30 = arith.constant dense<0.000000e+00> : vector<8x8xf32>
    %91 = tpu.matmul %90, %74, %cst_30 {dimension_numbers = #tpu.dot_dimension_numbers<[1], [0], [0], [1], [0, 0, 1, 1], [], []>} : vector<8x8xf32>, vector<8x8xf32>, vector<8x8xf32> -> vector<8x8xf32>
    %92 = vector.extract_strided_slice %28 {offsets = [0, 24], sizes = [8, 8], strides = [1, 1]} : vector<8x96xf32> to vector<8x8xf32>
    %93 = vector.extract_strided_slice %28 {offsets = [0, 56], sizes = [8, 8], strides = [1, 1]} : vector<8x96xf32> to vector<8x8xf32>
    %94 = vector.extract_strided_slice %28 {offsets = [0, 88], sizes = [8, 8], strides = [1, 1]} : vector<8x96xf32> to vector<8x8xf32>
    %95 = tpu.transpose %93, [1, 0] : vector<8x8xf32> -> vector<8x8xf32>
    %cst_31 = arith.constant dense<0.000000e+00> : vector<8x8xf32>
    %96 = tpu.matmul %92, %95, %cst_31 {dimension_numbers = #tpu.dot_dimension_numbers<[1], [0], [0], [1], [0, 0, 1, 1], [], []>} : vector<8x8xf32>, vector<8x8xf32>, vector<8x8xf32> -> vector<8x8xf32>
    %cst_32 = arith.constant 0.353553385 : f32
    %97 = vector.broadcast %cst_32 : f32 to vector<8x8xf32>
    %98 = arith.mulf %96, %97 : vector<8x8xf32>
    %cst_33 = arith.constant -1.000000e+30 : f32
    %99 = vector.broadcast %cst_33 : f32 to vector<8x8xf32>
    %100 = arith.select %31, %98, %99 : vector<8x8xi1>, vector<8x8xf32>
    %cst_34 = arith.constant dense<0xFF800000> : vector<8xf32>
    %101 = vector.multi_reduction <maximumf>, %100, %cst_34 [1] : vector<8x8xf32> to vector<8xf32>
    %102 = vector.shape_cast %101 : vector<8xf32> to vector<8x1xf32>
    %103 = vector.broadcast %102 : vector<8x1xf32> to vector<8x8xf32>
    %104 = arith.subf %100, %103 : vector<8x8xf32>
    %105 = math.exp %104 : vector<8x8xf32>
    %cst_35 = arith.constant dense<0.000000e+00> : vector<8xf32>
    %106 = vector.multi_reduction <add>, %105, %cst_35 [1] : vector<8x8xf32> to vector<8xf32>
    %107 = vector.shape_cast %106 : vector<8xf32> to vector<8x1xf32>
    %108 = tpu.reciprocal %107 {approx = true} : vector<8x1xf32> -> vector<8x1xf32>
    %109 = vector.broadcast %108 : vector<8x1xf32> to vector<8x8xf32>
    %110 = arith.mulf %105, %109 : vector<8x8xf32>
    %cst_36 = arith.constant dense<0.000000e+00> : vector<8x8xf32>
    %111 = tpu.matmul %110, %94, %cst_36 {dimension_numbers = #tpu.dot_dimension_numbers<[1], [0], [0], [1], [0, 0, 1, 1], [], []>} : vector<8x8xf32>, vector<8x8xf32>, vector<8x8xf32> -> vector<8x8xf32>
    %112 = tpu.concatenate %51, %71, %91, %111 in 1 : vector<8x8xf32>, vector<8x8xf32>, vector<8x8xf32>, vector<8x8xf32> -> vector<8x32xf32>
    %113 = arith.truncf %112 : vector<8x32xf32> to vector<8x32xbf16>
    %c0_37 = arith.constant 0 : index
    %c0_38 = arith.constant 0 : index
    %114 = vector.load %arg5[%c0_37, %c0_38] : memref<32x32xbf16, #tpu.memory_space<vmem>>, vector<32x32xbf16>
    %cst_39 = arith.constant dense<0.000000e+00> : vector<8x32xf32>
    %115 = tpu.matmul %113, %114, %cst_39 {dimension_numbers = #tpu.dot_dimension_numbers<[1], [0], [0], [1], [0, 0, 1, 1], [], []>} : vector<8x32xbf16>, vector<32x32xbf16>, vector<8x32xf32> -> vector<8x32xf32>
    %116 = arith.addf %1, %115 : vector<8x32xf32>
    %c0_40 = arith.constant 0 : index
    %c0_41 = arith.constant 0 : index
    %117 = vector.load %arg6[%c0_40, %c0_41] : memref<1x32xf32, #tpu.memory_space<vmem>>, vector<1x32xf32>
    %118 = vector.broadcast %117 : vector<1x32xf32> to vector<8x32xf32>
    %119 = arith.addf %116, %118 : vector<8x32xf32>
    %c0_42 = arith.constant 0 : index
    %c0_43 = arith.constant 0 : index
    %120 = vector.load %arg7[%c0_42, %c0_43] : memref<1x32xf32, #tpu.memory_space<vmem>>, vector<1x32xf32>
    %c0_44 = arith.constant 0 : index
    %c0_45 = arith.constant 0 : index
    %121 = vector.load %arg8[%c0_44, %c0_45] : memref<1x32xf32, #tpu.memory_space<vmem>>, vector<1x32xf32>
    %cst_46 = arith.constant dense<0.000000e+00> : vector<8xf32>
    %122 = vector.multi_reduction <add>, %119, %cst_46 [1] : vector<8x32xf32> to vector<8xf32>
    %123 = vector.shape_cast %122 : vector<8xf32> to vector<8x1xf32>
    %cst_47 = arith.constant 3.200000e+01 : f32
    %124 = vector.broadcast %cst_47 : f32 to vector<8x1xf32>
    %125 = arith.divf %123, %124 : vector<8x1xf32>
    %126 = vector.broadcast %125 : vector<8x1xf32> to vector<8x32xf32>
    %127 = arith.subf %119, %126 : vector<8x32xf32>
    %128 = arith.mulf %127, %127 : vector<8x32xf32>
    %cst_48 = arith.constant dense<0.000000e+00> : vector<8xf32>
    %129 = vector.multi_reduction <add>, %128, %cst_48 [1] : vector<8x32xf32> to vector<8xf32>
    %130 = vector.shape_cast %129 : vector<8xf32> to vector<8x1xf32>
    %cst_49 = arith.constant 3.200000e+01 : f32
    %131 = vector.broadcast %cst_49 : f32 to vector<8x1xf32>
    %132 = arith.divf %130, %131 : vector<8x1xf32>
    %133 = vector.broadcast %125 : vector<8x1xf32> to vector<8x32xf32>
    %134 = arith.subf %119, %133 : vector<8x32xf32>
    %cst_50 = arith.constant 9.99999974E-6 : f32
    %135 = vector.broadcast %cst_50 : f32 to vector<8x1xf32>
    %136 = arith.addf %132, %135 : vector<8x1xf32>
    %137 = math.rsqrt %136 : vector<8x1xf32>
    %138 = vector.broadcast %137 : vector<8x1xf32> to vector<8x32xf32>
    %139 = arith.mulf %134, %138 : vector<8x32xf32>
    %140 = vector.broadcast %120 : vector<1x32xf32> to vector<8x32xf32>
    %141 = arith.mulf %139, %140 : vector<8x32xf32>
    %142 = vector.broadcast %121 : vector<1x32xf32> to vector<8x32xf32>
    %143 = arith.addf %141, %142 : vector<8x32xf32>
    %144 = arith.truncf %143 : vector<8x32xf32> to vector<8x32xbf16>
    %c0_51 = arith.constant 0 : index
    %c0_52 = arith.constant 0 : index
    %145 = vector.load %arg9[%c0_51, %c0_52] : memref<32x4xbf16, #tpu.memory_space<vmem>>, vector<32x4xbf16>
    %cst_53 = arith.constant dense<0.000000e+00> : vector<8x4xf32>
    %146 = tpu.matmul %144, %145, %cst_53 {dimension_numbers = #tpu.dot_dimension_numbers<[1], [0], [0], [1], [0, 0, 1, 1], [], []>} : vector<8x32xbf16>, vector<32x4xbf16>, vector<8x4xf32> -> vector<8x4xf32>
    %c0_54 = arith.constant 0 : index
    %c0_55 = arith.constant 0 : index
    %147 = vector.load %arg10[%c0_54, %c0_55] : memref<1x4xf32, #tpu.memory_space<vmem>>, vector<1x4xf32>
    %148 = vector.broadcast %147 : vector<1x4xf32> to vector<8x4xf32>
    %149 = arith.addf %146, %148 : vector<8x4xf32>
    %cst_56 = arith.constant 1.000000e+00 : f32
    %150 = vector.broadcast %cst_56 : f32 to vector<8x4xf32>
    %151 = arith.mulf %149, %150 : vector<8x4xf32>
    %cst_57 = arith.constant dense<0xFF800000> : vector<8xf32>
    %152 = vector.multi_reduction <maximumf>, %151, %cst_57 [1] : vector<8x4xf32> to vector<8xf32>
    %153 = vector.shape_cast %152 : vector<8xf32> to vector<8x1xf32>
    %154 = vector.broadcast %153 : vector<8x1xf32> to vector<8x4xf32>
    %155 = arith.subf %151, %154 : vector<8x4xf32>
    %156 = math.exp %155 : vector<8x4xf32>
    %cst_58 = arith.constant dense<0.000000e+00> : vector<8xf32>
    %157 = vector.multi_reduction <add>, %156, %cst_58 [1] : vector<8x4xf32> to vector<8xf32>
    %158 = vector.shape_cast %157 : vector<8xf32> to vector<8x1xf32>
    %159 = tpu.reciprocal %158 {approx = true} : vector<8x1xf32> -> vector<8x1xf32>
    %160 = vector.broadcast %159 : vector<8x1xf32> to vector<8x4xf32>
    %161 = arith.mulf %156, %160 : vector<8x4xf32>
    %cst_59 = arith.constant 9.99999971E-10 : f32
    %162 = vector.broadcast %cst_59 : f32 to vector<8x4xf32>
    %163 = arith.cmpf ogt, %161, %162 : vector<8x4xf32>
    %cst_60 = arith.constant 0.000000e+00 : f32
    %164 = vector.broadcast %cst_60 : f32 to vector<8x4xf32>
    %165 = arith.select %163, %161, %164 : vector<8x4xi1>, vector<8x4xf32>
    %c0_61 = arith.constant 0 : index
    %c0_62 = arith.constant 0 : index
    %166 = vector.load %arg11[%c0_61, %c0_62] : memref<32x512xbf16, #tpu.memory_space<vmem>>, vector<32x512xbf16>
    %cst_63 = arith.constant dense<0.000000e+00> : vector<8x512xf32>
    %167 = tpu.matmul %144, %166, %cst_63 {dimension_numbers = #tpu.dot_dimension_numbers<[1], [0], [0], [1], [0, 0, 1, 1], [], []>} : vector<8x32xbf16>, vector<32x512xbf16>, vector<8x512xf32> -> vector<8x512xf32>
    %c0_64 = arith.constant 0 : index
    %c0_65 = arith.constant 0 : index
    %168 = vector.load %arg12[%c0_64, %c0_65] : memref<1x512xf32, #tpu.memory_space<vmem>>, vector<1x512xf32>
    %169 = vector.broadcast %168 : vector<1x512xf32> to vector<8x512xf32>
    %170 = arith.addf %167, %169 : vector<8x512xf32>
    %cst_66 = arith.constant 0.000000e+00 : f32
    %171 = vector.broadcast %cst_66 : f32 to vector<8x512xf32>
    %172 = arith.maximumf %170, %171 : vector<8x512xf32>
    %173 = vector.extract_strided_slice %172 {offsets = [0, 0], sizes = [8, 128], strides = [1, 1]} : vector<8x512xf32> to vector<8x128xf32>
    %174 = vector.extract_strided_slice %165 {offsets = [0, 0], sizes = [8, 1], strides = [1, 1]} : vector<8x4xf32> to vector<8x1xf32>
    %175 = vector.broadcast %174 : vector<8x1xf32> to vector<8x128xf32>
    %176 = arith.mulf %173, %175 : vector<8x128xf32>
    %177 = vector.extract_strided_slice %172 {offsets = [0, 128], sizes = [8, 128], strides = [1, 1]} : vector<8x512xf32> to vector<8x128xf32>
    %178 = vector.extract_strided_slice %165 {offsets = [0, 1], sizes = [8, 1], strides = [1, 1]} : vector<8x4xf32> to vector<8x1xf32>
    %179 = vector.broadcast %178 : vector<8x1xf32> to vector<8x128xf32>
    %180 = arith.mulf %177, %179 : vector<8x128xf32>
    %181 = vector.extract_strided_slice %172 {offsets = [0, 256], sizes = [8, 128], strides = [1, 1]} : vector<8x512xf32> to vector<8x128xf32>
    %182 = vector.extract_strided_slice %165 {offsets = [0, 2], sizes = [8, 1], strides = [1, 1]} : vector<8x4xf32> to vector<8x1xf32>
    %183 = vector.broadcast %182 : vector<8x1xf32> to vector<8x128xf32>
    %184 = arith.mulf %181, %183 : vector<8x128xf32>
    %185 = vector.extract_strided_slice %172 {offsets = [0, 384], sizes = [8, 128], strides = [1, 1]} : vector<8x512xf32> to vector<8x128xf32>
    %186 = vector.extract_strided_slice %165 {offsets = [0, 3], sizes = [8, 1], strides = [1, 1]} : vector<8x4xf32> to vector<8x1xf32>
    %187 = vector.broadcast %186 : vector<8x1xf32> to vector<8x128xf32>
    %188 = arith.mulf %185, %187 : vector<8x128xf32>
    %189 = tpu.concatenate %176, %180, %184, %188 in 1 : vector<8x128xf32>, vector<8x128xf32>, vector<8x128xf32>, vector<8x128xf32> -> vector<8x512xf32>
    %190 = arith.truncf %189 : vector<8x512xf32> to vector<8x512xbf16>
    %c0_67 = arith.constant 0 : index
    %c0_68 = arith.constant 0 : index
    %191 = vector.load %arg13[%c0_67, %c0_68] : memref<512x32xbf16, #tpu.memory_space<vmem>>, vector<512x32xbf16>
    %cst_69 = arith.constant dense<0.000000e+00> : vector<8x32xf32>
    %192 = tpu.matmul %190, %191, %cst_69 {dimension_numbers = #tpu.dot_dimension_numbers<[1], [0], [0], [1], [0, 0, 1, 1], [], []>} : vector<8x512xbf16>, vector<512x32xbf16>, vector<8x32xf32> -> vector<8x32xf32>
    %c0_70 = arith.constant 0 : index
    %c0_71 = arith.constant 0 : index
    %193 = vector.load %arg14[%c0_70, %c0_71] : memref<4x32xf32, #tpu.memory_space<vmem>>, vector<4x32xf32>
    %cst_72 = arith.constant dense<0.000000e+00> : vector<8x32xf32>
    %194 = tpu.matmul %165, %193, %cst_72 {dimension_numbers = #tpu.dot_dimension_numbers<[1], [0], [0], [1], [0, 0, 1, 1], [], []>} : vector<8x4xf32>, vector<4x32xf32>, vector<8x32xf32> -> vector<8x32xf32>
    %195 = arith.addf %192, %194 : vector<8x32xf32>
    %196 = arith.addf %119, %195 : vector<8x32xf32>
    %c0_73 = arith.constant 0 : index
    %c0_74 = arith.constant 0 : index
    %c0_75 = arith.constant 0 : index
    %197 = vector.load %arg15[%c0_73, %c0_74, %c0_75] : memref<1x8x32xf32, #tpu.memory_space<vmem>>, vector<1x8x32xf32>
    %198 = vector.shape_cast %197 : vector<1x8x32xf32> to vector<8x32xf32>
    %199 = vector.shape_cast %196 : vector<8x32xf32> to vector<1x8x32xf32>
    tpu.vector_store %arg15[%c0_73, %c0_74, %c0_75], %199 {strides = array<i32>} : memref<1x8x32xf32, #tpu.memory_space<vmem>>, vector<1x8x32xf32>,
    return
  }
  func.func @transform_0(%arg0: i32) -> (i32, i32, i32) {
    %c0_i32 = arith.constant 0 : i32
    %c0_i32_0 = arith.constant 0 : i32
    %c0_i32_1 = arith.constant 0 : i32
    return %arg0, %c0_i32, %c0_i32_0 : i32, i32, i32
  }
  func.func @transform_1(%arg0: i32) -> (i32, i32) {
    %c0_i32 = arith.constant 0 : i32
    %c0_i32_0 = arith.constant 0 : i32
    %c0_i32_1 = arith.constant 0 : i32
    return %c0_i32, %c0_i32_0 : i32, i32
  }
  func.func @transform_2(%arg0: i32) -> (i32, i32) {
    %c0_i32 = arith.constant 0 : i32
    %c0_i32_0 = arith.constant 0 : i32
    %c0_i32_1 = arith.constant 0 : i32
    return %c0_i32, %c0_i32_0 : i32, i32
  }
  func.func @transform_3(%arg0: i32) -> (i32, i32) {
    %c0_i32 = arith.constant 0 : i32
    %c0_i32_0 = arith.constant 0 : i32
    %c0_i32_1 = arith.constant 0 : i32
    return %c0_i32, %c0_i32_0 : i32, i32
  }
  func.func @transform_4(%arg0: i32) -> (i32, i32) {
    %c0_i32 = arith.constant 0 : i32
    %c0_i32_0 = arith.constant 0 : i32
    %c0_i32_1 = arith.constant 0 : i32
    return %c0_i32, %c0_i32_0 : i32, i32
  }
  func.func @transform_5(%arg0: i32) -> (i32, i32) {
    %c0_i32 = arith.constant 0 : i32
    %c0_i32_0 = arith.constant 0 : i32
    %c0_i32_1 = arith.constant 0 : i32
    return %c0_i32, %c0_i32_0 : i32, i32
  }
  func.func @transform_6(%arg0: i32) -> (i32, i32) {
    %c0_i32 = arith.constant 0 : i32
    %c0_i32_0 = arith.constant 0 : i32
    %c0_i32_1 = arith.constant 0 : i32
    return %c0_i32, %c0_i32_0 : i32, i32
  }
  func.func @transform_7(%arg0: i32) -> (i32, i32) {
    %c0_i32 = arith.constant 0 : i32
    %c0_i32_0 = arith.constant 0 : i32
    %c0_i32_1 = arith.constant 0 : i32
    return %c0_i32, %c0_i32_0 : i32, i32
  }
  func.func @transform_8(%arg0: i32) -> (i32, i32) {
    %c0_i32 = arith.constant 0 : i32
    %c0_i32_0 = arith.constant 0 : i32
    %c0_i32_1 = arith.constant 0 : i32
    return %c0_i32, %c0_i32_0 : i32, i32
  }
  func.func @transform_9(%arg0: i32) -> (i32, i32) {
    %c0_i32 = arith.constant 0 : i32
    %c0_i32_0 = arith.constant 0 : i32
    %c0_i32_1 = arith.constant 0 : i32
    return %c0_i32, %c0_i32_0 : i32, i32
  }
  func.func @transform_10(%arg0: i32) -> (i32, i32) {
    %c0_i32 = arith.constant 0 : i32
    %c0_i32_0 = arith.constant 0 : i32
    %c0_i32_1 = arith.constant 0 : i32
    return %c0_i32, %c0_i32_0 : i32, i32
  }
  func.func @transform_11(%arg0: i32) -> (i32, i32) {
    %c0_i32 = arith.constant 0 : i32
    %c0_i32_0 = arith.constant 0 : i32
    %c0_i32_1 = arith.constant 0 : i32
    return %c0_i32, %c0_i32_0 : i32, i32
  }
  func.func @transform_12(%arg0: i32) -> (i32, i32) {
    %c0_i32 = arith.constant 0 : i32
    %c0_i32_0 = arith.constant 0 : i32
    %c0_i32_1 = arith.constant 0 : i32
    return %c0_i32, %c0_i32_0 : i32, i32
  }
  func.func @transform_13(%arg0: i32) -> (i32, i32) {
    %c0_i32 = arith.constant 0 : i32
    %c0_i32_0 = arith.constant 0 : i32
    %c0_i32_1 = arith.constant 0 : i32
    return %c0_i32, %c0_i32_0 : i32, i32
  }
  func.func @transform_14(%arg0: i32) -> (i32, i32, i32) {
    %c0_i32 = arith.constant 0 : i32
    %c0_i32_0 = arith.constant 0 : i32
    %c0_i32_1 = arith.constant 0 : i32
    return %arg0, %c0_i32, %c0_i32_0 : i32, i32, i32
  }
}

</mosaic_0001>

<bundles_post_ra>
// kernel: block_forward.1
= control target key start
LH: loop header
LB: loop body
LE: loop exit
PB: predicated region body
PF: predicated region fallthrough
CT: control target
= control target key end

     0   :  { %s3009_s0 = inlined_call_operand.vmem [shape: f32[2,8,32], index: 0, kind: input, shape index: {}]   ;;  %s3010_s1 = inlined_call_operand.vmem [shape: f32[1,32], index: 1, kind: input, shape index: {}]   ;;  %s3011_s2 = inlined_call_operand.vmem [shape: f32[1,32], index: 2, kind: input, shape index: {}]   ;;  %s3012_s3 = inlined_call_operand.vmem [shape: bf16[32,96], index: 3, kind: input, shape index: {}]   ;;  %s3013_s4 = inlined_call_operand.vmem [shape: bf16[32,32], index: 4, kind: input, shape index: {}]   ;;  %s3014_s5 = inlined_call_operand.vmem [shape: f32[1,32], index: 5, kind: input, shape index: {}]   ;;  %s3015_s6 = inlined_call_operand.vmem [shape: f32[1,32], index: 6, kind: input, shape index: {}]   ;;  %s3016_s7 = inlined_call_operand.vmem [shape: f32[1,32], index: 7, kind: input, shape index: {}]   ;;  %s3017_s8 = inlined_call_operand.vmem [shape: bf16[32,4], index: 8, kind: input, shape index: {}]   ;;  %s3018_s9 = inlined_call_operand.vmem [shape: f32[1,4], index: 9, kind: input, shape index: {}]   ;;  %s3019_s10 = inlined_call_operand.vmem [shape: bf16[32,512], index: 10, kind: input, shape index: {}]   ;;  %s3020_s11 = inlined_call_operand.vmem [shape: f32[1,512], index: 11, kind: input, shape index: {}]   ;;  %s3021_s12 = inlined_call_operand.vmem [shape: bf16[512,32], index: 12, kind: input, shape index: {}]   ;;  %s3022_s13 = inlined_call_operand.vmem [shape: f32[4,32], index: 13, kind: input, shape index: {}]   ;;  %s3023_s14 = inlined_call_operand.hbm [shape: f32[2,8,32], index: 14, kind: output, shape index: {}]  }
   0x1   :  { %3024 = sst [smem:[#allocation5_spill]] %s3009_s0 }
   0x2   :  { %3025 = sst [smem:[#allocation6_spill]] %s3010_s1 }
   0x3   :  { %3026 = sst [smem:[#allocation7_spill]] %s3011_s2 }
   0x4   :  { %3027 = sst [smem:[#allocation8_spill]] %s3012_s3 }
   0x5   :  { %19 = vsyncpa [#allocation3], 0 }
   0x6   :  { %21 = vsyncpa [#allocation3 + $0x1], 0  ;;  %s2613_s29 = smov 0   ;;  %s2615_s30 = smov 0  }
   0x7   :  { %s2617_s15 = smov 0   ;;  %s2619_s16 = smov 0  }
   0x8 LB: > { %s2634_s17 = sadd.s32 4294967295, %s2515_s16   ;;  %s2094_s18 = sadd.s32 4294967294, %s2515_s16   ;;  %s2515_s16 = sphi %s2619_s16, %s3037_s16   ;;  %s2511_s15 = sphi %s2617_s15, %s3036_s15   ;;  %s2507_s30 = sphi %s2615_s30, %s3035_s30   ;;  %s2503_s29 = sphi %s2613_s29, %s3034_s29  }
   0x9   : > { %s2638_s19 = sadd.s32 1, %s2515_s16   ;;  %s333_s20 = sadd.s32 1, %s2511_s15 }
   0xa   : > { %s330_s21 = ssub.s32 %s2515_s16, %s2638_s19  ;;  %p343_p0 = scmp.ne.s32.totalorder %s2511_s15, %s2507_s30 }
   0xb   : > { %p331_p1 = scmp.eq.s32.totalorder %s330_s21, 0  ;;  %p344_p2 = scmp.eq.s32.totalorder %s2634_s17, 1 }
   0xc   : > { %p349_p3 = scmp.ne.s32.totalorder %s2507_s30, %s2503_s29  ;;  %p350_p4 = scmp.eq.s32.totalorder %s2094_s18, 1 }
   0xd   : > { %s2649_s22 = scalar_select %p331_p1, %s2511_s15, %s333_s20  }
   0xe   : > { %p2651_p5 = por %p344_p2, %p343_p0  ;;  %p2655_p6 = por %p350_p4, %p349_p3 }
   0xf   : > { %p2097_p7 = scmp.ge.s32.totalorder %s2515_s16, 1  ;;  %p414_p8 = scmp.lt.s32.totalorder %s2515_s16, 3 }
  0x11   : > { %p415_p9 = pnand %p2097_p7, %p414_p8 }
  0x12   : > { %p459_p10 = scmp.lt.s32.totalorder (!%p415_p9), %s2634_s17, 1  ;;  %vm467_vm0 = vcmask (!%p415_p9), 261120   ;;  %s3030_s0 = sld [smem:[#allocation5_spill]] (!%p415_p9)  ;;  %v2517_v8 = vmov (!%p415_p9), 0.0   ;;  %vm2518_vm1 = vmmov (!%p415_p9), 0   ;;  %vm564_vm2 = vcmask (!%p415_p9), 64512  }
  0x13   : > { %418 = sbr.rel (%p415_p9) target bundleno = 3512 (0xdb8), region = 76  ;;  %s3031_s3 = sld [smem:[#allocation8_spill]] (!%p415_p9)  ;;  %2246 = vmatprep.subr.bf16.mxu0 (!%p415_p9), %v2517_v8  ;;  %2250 = vmatprep.mubr.msk.bf16.mxu0 (!%p415_p9), %vm2518_vm1, %v2517_v8  ;;  %v556_v26 = vlaneseq (!%p415_p9)  ;;  %vm1242_vm4 = vcmask (!%p415_p9), 130048   ;;  %vm1244_vm5 = vcmask (!%p415_p9), 195584   ;;  %vm1411_vm6 = vcmask (!%p415_p9), 31744  }
  0x14   : > { %2254 = vmatprep.subr.mxu1 (!%p415_p9), %v2517_v8  ;;  %2256 = vmatprep.mubr.msk.f32.mxu1 (!%p415_p9), %vm2518_vm1, %v2517_v8  ;;  %s3032_s1 = sld [smem:[#allocation6_spill]] (!%p415_p9)  ;;  %s3033_s2 = sld [smem:[#allocation7_spill]] (!%p415_p9)  ;;  %vm1673_vm7 = vcmask (!%p415_p9), 1043456  }
  0x15   : > { %s2519_s21 = smov (!%p415_p9), 64   ;;  %s2522_s27 = smov (!%p415_p9), 120   ;;  %v2708_v27 = vshrl.u32 (!%p415_p9), %v556_v26, 7  ;;  %v2710_v28 = vand.u32 (!%p415_p9), 127, %v556_v26 }
  0x16   : > { %s2523_s28 = smov (!%p415_p9), 80   ;;  %s2525_s20 = smov (!%p415_p9), 72  }
  0x17   : > { %vm560_vm3 = vcmp.le.s32.totalorder (!%p415_p9), %v2710_v28, %v2708_v27 }
  0x19   : > { %v2379_v7 = vld [vmem:[%s3031_s3] sm:$0xff] (!%p415_p9)   ;;  %v2380_v9 = vld [vmem:[%s3031_s3 + $0x8] sm:$0xff] (!%p415_p9)  }
  0x1a   : > { %s460_s25 = scalar_select %p459_p10, %s2634_s17, 1  ;;  %2247 = vmatpush3.bf16.msra.mxu0 %v2379_v7  ;;  %v2100_v14 = vld [vmem:[%s3032_s1] ss:$0 sm:$0xff] }
  0x1b   : > { %2248 = vmatprep.subr.bf16.mxu0 %v2517_v8  ;;  %v2101_v16 = vld [vmem:[%s3033_s2] ss:$0 sm:$0xff] }
  0x1c   : > { %s2099_s26 = sshll.u32 %s460_s25, 3  ;;  %s2520_s25 = smov 96  }
  0x1d   : > { %s462_s18 = scalar_lea.vmem %s3030_s0, %s2099_s26  ;;  %s2521_s26 = smov 88  }
  0x1e   : > { %v2666_v0 = vld [vmem:[%s462_s18] sm:$0xff]  ;;  %2249 = vmatpush3.bf16.msra.mxu0 %v2380_v9  ;;  %s2524_s18 = smov 112  }
  0x1f   : > { %v468_v1 = vsel %vm467_vm0, %v2666_v0, 0.0  ;;  %2269 = vmatprep.subr.mxu0 %v2517_v8 }
  0x20   : > { %469 = vadd.xlane.f32.xlu0 %v468_v1 }
  0xad   : > { %v470_v2 = vpop.xlane.xlu0 %469 }
  0xae   : > { %v472_v3 = vmul.f32 0.03125, %v470_v2 }
  0xb0   : > { %v473_v4 = vsub.f32 %v2666_v0, %v472_v3 }
  0xb2   : > { %v474_v5 = vmul.f32 %v473_v4, %v473_v4 }
  0xb4   : > { %v475_v6 = vsel %vm467_vm0, %v474_v5, 0.0 }
  0xb5   : > { %476 = vadd.xlane.f32.xlu0 %v475_v6 }
 0x142   : > { %v477_v10 = vpop.xlane.xlu0 %476 }
 0x143   : > { %v478_v11 = vmul.f32 0.03125, %v477_v10 }
 0x145   : > { %v479_v12 = vadd.f32 1e-05, %v478_v11 }
 0x147   : > { %2429 = vrsqrt.f32 %v479_v12 }
 0x151   : > { %v2430_v13 = vpop.eup %2429 }
 0x152   : > { %v481_v15 = vmul.f32 %v2430_v13, %v473_v4 }
 0x154   : > { %v488_v17 = vmul.f32 %v2100_v14, %v481_v15 }
 0x156   : > { %v495_v18 = vadd.f32 %v2101_v16, %v488_v17 }
 0x158   : > { %v496_v19 = vpack.c.bf16 %v495_v18, %v495_v18 }
 0x15a   : > { %2251 = vmatmul.mubr.msk.bf16.vlgmr.msra.gmra.mrb[0].mxu0 %vm467_vm0, %v496_v19 }
 0x15b   : > { %2271 = vmatprep.mubr.msk.f32.mxu0 %vm2518_vm1, %v2517_v8 }
 0x22d   : > { %v2695_v20 = vpop.f32.mrb[0].mxu0 }
 0x22e   : > { %652 = vrot.lane.b32.xlu0 %v2695_v20, %s2519_s21  ;;  %562 = vrot.lane.b32.xlu1 %v2695_v20, %s2520_s25  ;;  %v2252_v21 = vpop.f32.mrb[1].mxu0  ;;  %s2526_s21 = smov 104   ;;  %s2527_s25 = smov 48  }
 0x22f   : > { %v553_v22 = vpop.f32.mrb[2].mxu0 }
 0x230   : > { %v2253_v23 = vpop.f32.mrb[3].mxu0 }
 0x232   : > { %730 = vrot.lane.b32.xlu0 %v2695_v20, %s2521_s26  ;;  %s2528_s26 = smov 40  }
 0x236   : > { %728 = vrot.lane.b32.xlu0 %v2695_v20, %s2522_s27  ;;  %s2529_s27 = smov 56  }
 0x2a0   : > { %v563_v24 = vpop.permute.xlu1 %562  ;;  %v653_v25 = vpop.permute.xlu0 %652 }
 0x2a1   : > { %2255 = vmatpush3.xpose.msk.msra.mxu1 %vm564_vm2, %v563_v24 }
 0x2a2   : > { %2259 = vmatprep.subr.mxu1 %v2517_v8 }
 0x2a4   : > { %2257 = vmatmul.mubr.msk.f32.vlgmr.msra.gmra.mrb[0].mxu1 %vm564_vm2, %v2695_v20  ;;  %v731_v39 = vpop.permute.xlu0 %730 }
 0x2a5   : > { %2260 = vmatpush3.msra.mxu1 %v653_v25  ;;  %2261 = vmatprep.mubr.msk.f32.mxu1 %vm2518_vm1, %v2517_v8 }
 0x2a6   : > { %2264 = vmatprep.subr.mxu1 %v2517_v8 }
 0x2a8   : > { %v729_v40 = vpop.permute.xlu0 %728 }
 0x377   : > { %v635_v29 = vpop.f32.mrb[0].mxu1 }
 0x378   : > { %v639_v30 = vmul.f32 0.35355338, %v635_v29  ;;  %v2258_v31 = vpop.f32.mrb[1].mxu1 }
 0x379   : > { %v2381_v31 = vld [vmem:[%s3013_s4] sm:$0xff]  }
 0x37a   : > { %v640_v32 = vsel %vm560_vm3, %v639_v30, -1e+30 }
 0x37b   : > { %v641_v33 = vsel %vm564_vm2, %v640_v32, -inf }
 0x37c   : > { %642 = vmax.xlane.f32.xlu1 %v641_v33 }
 0x38d   : > { %897 = vrot.lane.b32.xlu1 %v2695_v20, %s2523_s28  ;;  %s456_s28 = sand.u32 1, %s2507_s30  }
 0x38e   : > { %s2098_s2 = sshll.u32 %s456_s28, 3  ;;  %s2022_s1 = scalar_lea.sflag [#allocation3], %s456_s28 }
 0x409   : > { %v643_v34 = vpop.xlane.xlu1 %642 }
 0x40a   : > { %v644_v35 = vsub.f32 %v640_v32, %v643_v34  ;;  %v2382_v32 = vld [vmem:[%s3013_s4 + $0x8] sm:$0xff]  }
 0x40c   : > { %v645_v36 = vmul.f32 1.442695, %v644_v35 }
 0x40d   : > { %v898_v45 = vpop.permute.xlu1 %897 }
 0x40e   : > { %2431 = vpow2.f32 %v645_v36 }
 0x418   : > { %v2432_v37 = vpop.eup %2431 }
 0x419   : > { %v647_v38 = vsel %vm564_vm2, %v2432_v37, 0.0 }
 0x41a   : > { %648 = vadd.xlane.f32.xlu0 %v647_v38 }
 0x430   : > { %895 = vrot.lane.b32.xlu0 %v2695_v20, %s2524_s18  ;;  %s2172_s18 = sshll.u32 %s2634_s17, 7  ;;  %s2537_s17 = smov [#allocation2]  }
 0x434   : > { %1064 = vrot.lane.b32.xlu0 %v2695_v20, %s2525_s20  ;;  %s458_s20 = scalar_lea.vmem [#allocation2], %s2098_s2  ;;  %s2457_s2 = sshll.u32 %s2537_s17, 4  ;;  %s2458_s2 = int_to_ptr.vmem [resolvable:$false] %s2457_s2 }
 0x435   : > { %s2459_s3 = scalar_lea.vmem %s2458_s2, 256 }
 0x438   : > { %1062 = vrot.lane.b32.xlu0 %v2695_v20, %s2526_s21  ;;  %s2035_s21 = sshll.u32 %s458_s20, 4  ;;  %s2968_s21 = int_to_ptr.vmem [resolvable:$true] %s2035_s21 }
 0x439   : > { %p2460_p0 = scmp.lt.s32.totalorder %s2968_s21, %s2458_s2 }
 0x4a7   : > { %v649_v41 = vpop.xlane.xlu0 %648 }
 0x4a8   : > { %2433 = vrcp.f32 %v649_v41 }
 0x4ab   : > { %v896_v44 = vpop.permute.xlu0 %895 }
 0x4af   : > { %v1065_v46 = vpop.permute.xlu0 %1064 }
 0x4b2   : > { %v2434_v42 = vpop.eup %2433 }
 0x4b3   : > { %v651_v43 = vmul.f32 %v2434_v42, %v2432_v37  ;;  %v1063_v47 = vpop.permute.xlu0 %1062 }
 0x4b5   : > { %2262 = vmatmul.mubr.msk.f32.vlgmr.msra.gmra.mrb[2].mxu1 %vm564_vm2, %v651_v43 }
 0x4b6   : > { %2265 = vmatpush3.xpose.msk.msra.mxu1 %vm564_vm2, %v731_v39  ;;  %2266 = vmatprep.mubr.msk.f32.mxu1 %vm2518_vm1, %v2517_v8 }
 0x4b7   : > { %2274 = vmatprep.subr.mxu1 %v2517_v8 }
 0x4b9   : > { %2267 = vmatmul.mubr.msk.f32.vlgmr.msra.gmra.mrb[4].mxu1 %vm564_vm2, %v729_v40 }
 0x4ba   : > { %2275 = vmatpush3.xpose.msk.msra.mxu1 %vm564_vm2, %v898_v45  ;;  %2276 = vmatprep.mubr.msk.f32.mxu1 %vm2518_vm1, %v2517_v8 }
 0x4bb   : > { %2284 = vmatprep.subr.mxu1 %v2517_v8 }
 0x4bd   : > { %2277 = vmatmul.mubr.msk.f32.vlgmr.msra.gmra.mrb[6].mxu1 %vm564_vm2, %v896_v44 }
 0x4be   : > { %2285 = vmatpush3.xpose.msk.msra.mxu1 %vm564_vm2, %v1065_v46  ;;  %2286 = vmatprep.mubr.msk.f32.mxu1 %vm2518_vm1, %v2517_v8 }
 0x4bf   : > { %2294 = vmatprep.subr.bf16.mxu1 %v2517_v8 }
 0x4c1   : > { %2287 = vmatmul.mubr.msk.f32.vlgmr.msra.gmra.mrb[8].mxu1 %vm564_vm2, %v1063_v47  ;;  %v2120_v47 = vld [vmem:[%s3014_s5] ss:$0 sm:$0xff] }
 0x4c2   : > { %2298 = vmatprep.mubr.msk.bf16.mxu1 %vm2518_vm1, %v2517_v8  ;;  %2295 = vmatpush3.bf16.msra.mxu1 %v2381_v31 }
 0x4c3   : > { %2296 = vmatprep.subr.bf16.mxu1 %v2517_v8 }
 0x4c6   : > { %2297 = vmatpush3.bf16.msra.mxu1 %v2382_v32 }
 0x588   : > { %v2741_v48 = vpop.f32.mrb[2].mxu1 }
 0x589   : > { %v2263_v49 = vpop.f32.mrb[3].mxu1 }
 0x58c   : > { %v802_v50 = vpop.f32.mrb[4].mxu1 }
 0x58d   : > { %v806_v51 = vmul.f32 0.35355338, %v802_v50  ;;  %v2268_v52 = vpop.f32.mrb[5].mxu1 }
 0x58f   : > { %v807_v53 = vsel %vm560_vm3, %v806_v51, -1e+30 }
 0x590   : > { %v969_v54 = vpop.f32.mrb[6].mxu1  ;;  %v808_v55 = vsel %vm564_vm2, %v807_v53, -inf }
 0x591   : > { %v973_v56 = vmul.f32 0.35355338, %v969_v54  ;;  %809 = vmax.xlane.f32.xlu0 %v808_v55  ;;  %v2278_v57 = vpop.f32.mrb[7].mxu1 }
 0x593   : > { %v974_v58 = vsel %vm560_vm3, %v973_v56, -1e+30 }
 0x594   : > { %v1136_v59 = vpop.f32.mrb[8].mxu1  ;;  %v975_v60 = vsel %vm564_vm2, %v974_v58, -inf }
 0x595   : > { %v1140_v61 = vmul.f32 0.35355338, %v1136_v59  ;;  %976 = vmax.xlane.f32.xlu1 %v975_v60  ;;  %v2288_v62 = vpop.f32.mrb[9].mxu1  ;;  %v2383_v59 = vld [vmem:[%s3019_s10] ss:$16 sps:$4 sm:$0xff]  }
 0x596   : > { %v2386_v60 = vld [vmem:[%s3017_s8] sm:$0xff]   ;;  %v2533_v62 = vmov 0  }
 0x597   : > { %v1141_v63 = vsel %vm560_vm3, %v1140_v61, -1e+30  ;;  %v2389_v61 = vld [vmem:[%s3019_s10 + $0x24] ss:$16 sps:$4 sm:$0xff]   ;;  %2375 = vset.pattern.permute.xlu1 %v2533_v62 }
 0x598   : > { %v1142_v1 = vsel %vm564_vm2, %v1141_v63, -inf }
 0x599   : > { %1143 = vmax.xlane.f32.xlu0 %v1142_v1  ;;  %v2390_v1 = vld [vmem:[%s3017_s8 + $0x8] sm:$0xff]  }
 0x5a6   : > { %986 = vrot.lane.b32.xlu1 %v2695_v20, %s2527_s25  ;;  %s2530_s25 = smov 8  }
 0x61e   : > { %v810_v2 = vpop.xlane.xlu0 %809 }
 0x61f   : > { %v811_v3 = vsub.f32 %v807_v53, %v810_v2  ;;  %v2393_v2 = vld [vmem:[%s3019_s10 + $0xc] ss:$16 sps:$4 sm:$0xff]  }
 0x621   : > { %v812_v4 = vmul.f32 1.442695, %v811_v3 }
 0x622   : > { %v977_v5 = vpop.xlane.xlu1 %976 }
 0x623   : > { %2435 = vpow2.f32 %v812_v4  ;;  %v978_v6 = vsub.f32 %v974_v58, %v977_v5 }
 0x625   : > { %v979_v7 = vmul.f32 1.442695, %v978_v6 }
 0x626   : > { %v1144_v9 = vpop.xlane.xlu0 %1143  ;;  %v987_v19 = vpop.permute.xlu1 %986 }
 0x627   : > { %2437 = vpow2.f32 %v979_v7  ;;  %v1145_v10 = vsub.f32 %v1141_v63, %v1144_v9  ;;  %v2387_v63 = vld [vmem:[%s3019_s10 + $0x20] ss:$16 sps:$4 sm:$0xff]  }
 0x628   : > { %v2121_v7 = vld [vmem:[%s3015_s6] ss:$0 sm:$0xff] }
 0x629   : > { %v1146_v11 = vmul.f32 1.442695, %v1145_v10  ;;  %v2122_v10 = vld [vmem:[%s3016_s7] ss:$0 sm:$0xff] }
 0x62b   : > { %2439 = vpow2.f32 %v1146_v11 }
 0x62d   : > { %v2436_v12 = vpop.eup %2435 }
 0x62e   : > { %v814_v13 = vsel %vm564_vm2, %v2436_v12, 0.0 }
 0x62f   : > { %815 = vadd.xlane.f32.xlu0 %v814_v13  ;;  %v2391_v13 = vld [vmem:[%s3019_s10 + $0x8] ss:$16 sps:$4 sm:$0xff]  }
 0x631   : > { %v2438_v14 = vpop.eup %2437 }
 0x632   : > { %v981_v15 = vsel %vm564_vm2, %v2438_v14, 0.0 }
 0x633   : > { %982 = vadd.xlane.f32.xlu0 %v981_v15  ;;  %v2396_v15 = vld [vmem:[%s3019_s10 + $0x2c] ss:$16 sps:$4 sm:$0xff]  }
 0x635   : > { %v2440_v16 = vpop.eup %2439 }
 0x636   : > { %v1148_v17 = vsel %vm564_vm2, %v2440_v16, 0.0 }
 0x637   : > { %1149 = vadd.xlane.f32.xlu1 %v1148_v17  ;;  %v2123_v17 = vld [vmem:[%s3018_s9] ss:$0 sm:$0xff] }
 0x648   : > { %1153 = vrot.lane.b32.xlu1 %v2695_v20, %s2528_s26  ;;  %s2531_s26 = smov 16  }
 0x649   : > { %819 = vrot.lane.b32.xlu0 %v2695_v20, %s2529_s27  ;;  %s2532_s27 = smov 24  }
 0x6bc   : > { %v816_v18 = vpop.xlane.xlu0 %815 }
 0x6bd   : > { %2441 = vrcp.f32 %v816_v18 }
 0x6c0   : > { %v983_v21 = vpop.xlane.xlu0 %982 }
 0x6c1   : > { %2443 = vrcp.f32 %v983_v21 }
 0x6c4   : > { %v1150_v22 = vpop.xlane.xlu1 %1149  ;;  %v820_v23 = vpop.permute.xlu0 %819 }
 0x6c5   : > { %2445 = vrcp.f32 %v1150_v22  ;;  %2270 = vmatpush3.msra.mxu0 %v820_v23 }
 0x6c6   : > { %2279 = vmatprep.subr.mxu0 %v2517_v8 }
 0x6c7   : > { %v2442_v24 = vpop.eup %2441 }
 0x6c8   : > { %v818_v25 = vmul.f32 %v2442_v24, %v2436_v12  ;;  %v1154_v28 = vpop.permute.xlu1 %1153 }
 0x6ca   : > { %2272 = vmatmul.mubr.msk.f32.vlgmr.msra.gmra.mrb[4].mxu0 %vm564_vm2, %v818_v25 }
 0x6cb   : > { %v2444_v26 = vpop.eup %2443  ;;  %2280 = vmatpush3.msra.mxu0 %v987_v19  ;;  %2281 = vmatprep.mubr.msk.f32.mxu0 %vm2518_vm1, %v2517_v8 }
 0x6cc   : > { %v985_v20 = vmul.f32 %v2444_v26, %v2438_v14  ;;  %2289 = vmatprep.subr.mxu0 %v2517_v8 }
 0x6ce   : > { %2282 = vmatmul.mubr.msk.f32.vlgmr.msra.gmra.mrb[6].mxu0 %vm564_vm2, %v985_v20 }
 0x6cf   : > { %v2446_v29 = vpop.eup %2445  ;;  %2290 = vmatpush3.msra.mxu0 %v1154_v28  ;;  %2291 = vmatprep.mubr.msk.f32.mxu0 %vm2518_vm1, %v2517_v8 }
 0x6d0   : > { %v1152_v30 = vmul.f32 %v2446_v29, %v2440_v16  ;;  %2302 = vmatprep.subr.bf16.mxu0 %v2517_v8  ;;  %v2394_v16 = vld [vmem:[%s3019_s10 + $0x28] ss:$16 sps:$4 sm:$0xff]  }
 0x6d2   : > { %2292 = vmatmul.mubr.msk.f32.vlgmr.msra.gmra.mrb[8].mxu0 %vm564_vm2, %v1152_v30 }
 0x6d3   : > { %2306 = vmatprep.mubr.msk.bf16.mxu0 %vm2518_vm1, %v2517_v8  ;;  %2303 = vmatpush3.bf16.msra.mxu0 %v2386_v60  ;;  %v2421_v60 = vld [vmem:[%s3021_s12 + $0x78] sm:$0xff]  }
 0x6d4   : > { %2304 = vmatprep.subr.bf16.mxu0 %v2517_v8 }
 0x6d7   : > { %2305 = vmatpush3.bf16.msra.mxu0 %v2390_v1  ;;  %v2535_v1 = vmov 3  }
 0x6d8   : > { %1536 = vmatprep.subr.bf16.mxu0 %v2393_v2  ;;  %v2412_v2 = vld [vmem:[%s3021_s12 + $0x90] sm:$0xff]  }
 0x79d   : > { %v891_v33 = vpop.f32.mrb[4].mxu0 }
 0x79e   : > { %1230 = vrot.lane.b32.xlu1 %v891_v33, %s2530_s25  ;;  %v2273_v34 = vpop.f32.mrb[5].mxu0 }
 0x7a1   : > { %v1058_v35 = vpop.f32.mrb[6].mxu0 }
 0x7a2   : > { %1234 = vrot.lane.b32.xlu0 %v1058_v35, %s2531_s26  ;;  %v2283_v36 = vpop.f32.mrb[7].mxu0  ;;  %s2966_s26 = scalar_lea.hbm %s3023_s14, %s2172_s18 }
 0x7a5   : > { %v1225_v37 = vpop.f32.mrb[8].mxu0 }
 0x7a6   : > { %1238 = vrot.lane.b32.xlu1 %v1225_v37, %s2532_s27  ;;  %v2293_v38 = vpop.f32.mrb[9].mxu0  ;;  %v1670_v37 = vld [vmem:[%s3022_s13] sm:$0xf]  ;;  %s2453_s27 = scalar_lea.vmem %s2968_s21, 128 }
 0x7a7   : > { %v2534_v38 = vmov 1   ;;  %p2454_p11 = scmp.ne.s32.totalorder %s2968_s21, %s2453_s27  ;;  %p2461_p1 = scmp.lt.s32.totalorder %s2459_s3, %s2453_s27 }
 0x7a8   : > { %2374 = vset.pattern.permute.xlu0 %v2534_v38 }
 0x7a9   : > { %p2455_p12 = pnand %p2454_p11, %p2651_p5  ;;  %p2462_p2 = por %p2461_p1, %p2460_p0 }
 0x7ab   : > { %p2456_p13 = pneg %p2455_p12 }
 0x7ad   : > { %p2463_p3 = pnand %p2462_p2, %p2456_p13 }
 0x810   : > { %v1231_v39 = vpop.permute.xlu1 %1230 }
 0x811   : > { %v1241_v41 = vsel %vm564_vm2, %v2741_v48, %v1231_v39  ;;  %v2397_v39 = vld [vmem:[%s3021_s12 + $0x40] sm:$0xff]  }
 0x814   : > { %v1235_v40 = vpop.permute.xlu0 %1234 }
 0x815   : > { %v1243_v42 = vsel %vm1242_vm4, %v1241_v41, %v1235_v40  ;;  %v2398_v40 = vld [vmem:[%s3021_s12] sm:$0xff]   ;;  %v2399_v41 = vld [vmem:[%s3021_s12 + $0x48] sm:$0xff]  }
 0x818   : > { %v1239_v43 = vpop.permute.xlu1 %1238 }
 0x819   : > { %v1245_v44 = vsel %vm1244_vm5, %v1243_v42, %v1239_v43  ;;  %v2403_v42 = vld [vmem:[%s3021_s12 + $0xc0] sm:$0xff]   ;;  %v2400_v43 = vld [vmem:[%s3021_s12 + $0x8] sm:$0xff]  }
 0x81a   : > { %v1246_v45 = vpack.c.bf16 %v1245_v44, %v1245_v44  ;;  %v2401_v44 = vld [vmem:[%s3021_s12 + $0x50] sm:$0xff]  }
 0x81c   : > { %2299 = vmatmul.mubr.msk.bf16.vlgmr.msra.gmra.mrb[12].mxu1 %vm467_vm0, %v1246_v45  ;;  %v2402_v45 = vld [vmem:[%s3021_s12 + $0x10] sm:$0xff]  }
 0x81d   : > { %1527 = vmatprep.mubr.bf16.mxu1 %v2533_v62 }
 0x8ef   : > { %v1300_v46 = vpop.f32.mrb[12].mxu1 }
 0x8f0   : > { %v1306_v49 = vadd.f32 %v1300_v46, %v2666_v0  ;;  %v2300_v50 = vpop.f32.mrb[13].mxu1  ;;  %v2385_v0 = vld [vmem:[%s3019_s10 + $0x4] ss:$16 sps:$4 sm:$0xff]   ;;  %v2405_v46 = vld [vmem:[%s3021_s12 + $0x58] sm:$0xff]  }
 0x8f1   : > { %v1303_v51 = vpop.f32.mrb[14].mxu1  ;;  %1495 = vmatprep.subr.bf16.mxu1 %v2385_v0  ;;  %v2410_v50 = vld [vmem:[%s3021_s12 + $0x20] sm:$0xff]  }
 0x8f2   : > { %v2787_v52 = vadd.f32 %v2120_v47, %v1306_v49  ;;  %v2301_v53 = vpop.f32.mrb[15].mxu1  ;;  %1496 = vmatpush1.bf16.msra.mxu1 %v2383_v59  ;;  %v2406_v47 = vld [vmem:[%s3021_s12 + $0x18] sm:$0xff]   ;;  %v2409_v49 = vld [vmem:[%s3021_s12 + $0x60] sm:$0xff]   ;;  %v2413_v51 = vld [vmem:[%s3021_s12 + $0x68] sm:$0xff]  }
 0x8f3   : > { %1497 = vmatprep.subr.bf16.mxu1 %v2389_v61  ;;  %v2414_v53 = vld [vmem:[%s3021_s12 + $0x28] sm:$0xff]   ;;  %v2422_v61 = vld [vmem:[%s3021_s12 + $0x38] sm:$0xff]  }
 0x8f4   : > { %v1317_v48 = vsel %vm467_vm0, %v2787_v52, 0.0  ;;  %v2407_v59 = vld [vmem:[%s3021_s12 + $0xc8] sm:$0xff]  }
 0x8f5   : > { %1318 = vadd.xlane.f32.xlu0 %v1317_v48  ;;  %v2417_v48 = vld [vmem:[%s3021_s12 + $0x70] sm:$0xff]  }
 0x8f6   : > { %1498 = vmatpush1.bf16.msra.mxu1 %v2387_v63  ;;  %v2411_v63 = vld [vmem:[%s3021_s12 + $0xd0] sm:$0xff]  }
 0x8f7   : > { %2310 = vmatprep.subr.mxu1 %v2517_v8 }
 0x982   : > { %v1319_v54 = vpop.xlane.xlu0 %1318 }
 0x983   : > { %v1320_v55 = vmul.f32 0.03125, %v1319_v54  ;;  %v2418_v54 = vld [vmem:[%s3021_s12 + $0x30] sm:$0xff]  }
 0x985   : > { %v1321_v56 = vsub.f32 %v2787_v52, %v1320_v55 }
 0x987   : > { %v1322_v57 = vmul.f32 %v1321_v56, %v1321_v56 }
 0x989   : > { %v1323_v58 = vsel %vm467_vm0, %v1322_v57, 0.0 }
 0x98a   : > { %1324 = vadd.xlane.f32.xlu1 %v1323_v58  ;;  %v2404_v58 = vld [vmem:[%s3021_s12 + $0x80] sm:$0xff]  }
 0xa17   : > { %v1325_v3 = vpop.xlane.xlu1 %1324 }
 0xa18   : > { %v1326_v4 = vmul.f32 0.03125, %v1325_v3  ;;  %v2415_v3 = vld [vmem:[%s3021_s12 + $0xd8] sm:$0xff]  }
 0xa1a   : > { %v1327_v5 = vadd.f32 1e-05, %v1326_v4  ;;  %v2536_v4 = vmov 2  }
 0xa1c   : > { %2447 = vrsqrt.f32 %v1327_v5  ;;  %v2416_v5 = vld [vmem:[%s3021_s12 + $0x98] sm:$0xff]  }
 0xa26   : > { %v2448_v6 = vpop.eup %2447 }
 0xa27   : > { %v1329_v9 = vmul.f32 %v2448_v6, %v1321_v56  ;;  %v2419_v6 = vld [vmem:[%s3021_s12 + $0xe0] sm:$0xff]  }
 0xa29   : > { %v1336_v11 = vmul.f32 %v2121_v7, %v1329_v9  ;;  %v2420_v7 = vld [vmem:[%s3021_s12 + $0xa0] sm:$0xff]   ;;  %v2423_v9 = vld [vmem:[%s3021_s12 + $0xe8] sm:$0xff]  }
 0xa2b   : > { %v1343_v12 = vadd.f32 %v2122_v10, %v1336_v11  ;;  %v2424_v10 = vld [vmem:[%s3021_s12 + $0xa8] sm:$0xff]   ;;  %v2425_v11 = vld [vmem:[%s3021_s12 + $0xf0] sm:$0xff]  }
 0xa2d   : > { %v1344_v14 = vpack.c.bf16 %v1343_v12, %v1343_v12  ;;  %v2426_v12 = vld [vmem:[%s3021_s12 + $0xb0] sm:$0xff]  }
 0xa2f   : > { %2307 = vmatmul.mubr.msk.bf16.vlgmr.msra.gmra.mrb[12].mxu0 %vm467_vm0, %v1344_v14  ;;  %2135 = vmatmul.mubr.msk.bf16.vlgmr.msra.gmra.mrb[16].mxu1 %vm467_vm0, %v1344_v14 }
 0xa30   : > { %1537 = vmatpush1.bf16.msra.mxu0 %v2391_v13  ;;  %1568 = vmatprep.mubr.bf16.mxu0 %v2533_v62  ;;  %v2408_v62 = vld [vmem:[%s3021_s12 + $0x88] sm:$0xff]   ;;  %v2427_v13 = vld [vmem:[%s3021_s12 + $0xf8] sm:$0xff]  }
 0xa31   : > { %1538 = vmatprep.subr.bf16.mxu0 %v2396_v15  ;;  %2312 = vmatprep.mubr.msk.f32.mxu1 %vm2518_vm1, %v2517_v8  ;;  %v1437_v15 = vsub.s32 0, %v2708_v27 }
 0xa32   : > { %2311 = vmatpush3.msk.msra.mxu1 %vm1673_vm7, %v1670_v37 }
 0xa33   : > { %2224 = vmatprep.subr.bf16.mxu1 %v2403_v42 }
 0xa34   : > { %1539 = vmatpush1.bf16.msra.mxu0 %v2394_v16  ;;  %v1441_v16 = vsub.s32 1, %v2708_v27 }
 0xa35   : > { %2202 = vmatprep.subr.bf16.mxu0 %v2397_v39 }
 0xa37   : > { %2136 = vmatmul.mubr.msk.bf16.vlgmr.msra.gmra.mrb[16].mxu0 %vm467_vm0, %v1344_v14  ;;  %v2428_v14 = vld [vmem:[%s3021_s12 + $0xb8] sm:$0xff]  }
 0xa38   : > { %2203 = vmatpush3.bf16.msra.mxu0 %v2398_v40 }
 0xa39   : > { %2204 = vmatprep.subr.bf16.mxu0 %v2399_v41 }
 0xa3c   : > { %2205 = vmatpush3.bf16.msra.mxu0 %v2400_v43 }
 0xa3d   : > { %2206 = vmatprep.subr.bf16.mxu0 %v2401_v44 }
 0xa40   : > { %2207 = vmatpush3.bf16.msra.mxu0 %v2402_v45 }
 0xa41   : > { %2208 = vmatprep.subr.bf16.mxu0 %v2405_v46 }
 0xa44   : > { %2209 = vmatpush3.bf16.msra.mxu0 %v2406_v47 }
 0xa45   : > { %2210 = vmatprep.subr.bf16.mxu0 %v2409_v49 }
 0xa48   : > { %2211 = vmatpush3.bf16.msra.mxu0 %v2410_v50 }
 0xa49   : > { %2212 = vmatprep.subr.bf16.mxu0 %v2413_v51 }
 0xa4c   : > { %2213 = vmatpush3.bf16.msra.mxu0 %v2414_v53 }
 0xa4d   : > { %2214 = vmatprep.subr.bf16.mxu0 %v2417_v48 }
 0xa50   : > { %2215 = vmatpush3.bf16.msra.mxu0 %v2418_v54 }
 0xa51   : > { %2216 = vmatprep.subr.bf16.mxu0 %v2421_v60 }
 0xa54   : > { %2217 = vmatpush3.bf16.msra.mxu0 %v2422_v61 }
 0xb02   : > { %v1405_v18 = vpop.f32.mrb[12].mxu0  ;;  %v2839_v19 = vpop.f32.mrb[16].mxu1 }
 0xb03   : > { %v1406_v21 = vadd.f32 %v2123_v17, %v1405_v18  ;;  %v2308_v22 = vpop.f32.mrb[13].mxu0  ;;  %v2841_v23 = vpop.f32.mrb[17].mxu1  ;;  %v1433_v17 = vld [vmem:[%s3020_s11] sm:$0xf] }
 0xb04   : > { %v1408_v24 = vpop.f32.mrb[14].mxu0  ;;  %v1533_v25 = vpop.f32.mrb[18].mxu1  ;;  %v1438_v18 = vrot.slane %v1433_v17, %v1437_v15  ;;  %v1449_v22 = vsub.s32 3, %v2708_v27 }
 0xb05   : > { %v2309_v26 = vpop.f32.mrb[15].mxu0  ;;  %v1534_v20 = vpop.f32.mrb[19].mxu1  ;;  %v1412_v8 = vsel %vm1411_vm6, %v1406_v21, -inf }
 0xb06   : > { %1413 = vmax.xlane.f32.xlu0 %v1412_v8  ;;  %v1530_v24 = vadd.f32 %v2839_v19, %v1438_v18  ;;  %v1450_v26 = vrot.slane %v1433_v17, %v1449_v22  ;;  %v1445_v20 = vsub.s32 2, %v2708_v27 }
 0xb08   : > { %v1577_v8 = vmax.f32 %v1530_v24, 0.0 }
 0xb0a   : > { %v2844_v28 = vpop.f32.mrb[16].mxu0 }
 0xb0b   : > { %v2846_v29 = vpop.f32.mrb[17].mxu0 }
 0xb0c   : > { %v1574_v30 = vpop.f32.mrb[18].mxu0 }
 0xb0d   : > { %v1575_v31 = vpop.f32.mrb[19].mxu0 }
 0xb0e   : > { %v1573_v31 = vadd.f32 %v2846_v29, %v1450_v26 }
 0xb10   : > { %v1580_v39 = vmax.f32 %v1573_v31, 0.0 }
 0xb93   : > { %v1414_v32 = vpop.xlane.xlu0 %1413 }
 0xb94   : > { %v1415_v33 = vsub.f32 %v1406_v21, %v1414_v32  ;;  %v1442_v21 = vrot.slane %v1433_v17, %v1441_v16 }
 0xb96   : > { %v1416_v34 = vmul.f32 1.442695, %v1415_v33  ;;  %v1532_v25 = vadd.f32 %v2841_v23, %v1442_v21 }
 0xb98   : > { %2449 = vpow2.f32 %v1416_v34  ;;  %v1578_v30 = vmax.f32 %v1532_v25, 0.0  ;;  %v1446_v34 = vrot.slane %v1433_v17, %v1445_v20 }
 0xb9a   : > { %v1571_v40 = vadd.f32 %v2844_v28, %v1446_v34 }
 0xb9c   : > { %v1579_v41 = vmax.f32 %v1571_v40, 0.0 }
 0xba2   : > { %v2450_v35 = vpop.eup %2449 }
 0xba3   : > { %v1418_v36 = vsel %vm1411_vm6, %v2450_v35, 0.0 }
 0xba4   : > { %1419 = vadd.xlane.f32.xlu0 %v1418_v36 }
 0xc31   : > { %v1420_v55 = vpop.xlane.xlu0 %1419 }
 0xc32   : > { %2451 = vrcp.f32 %v1420_v55 }
 0xc3c   : > { %v2452_v56 = vpop.eup %2451 }
 0xc3d   : > { %v1422_v57 = vmul.f32 %v2452_v56, %v2450_v35 }
 0xc3f   : > { %vm1423_vm8 = vcmp.gt.f32.partialorder %v1422_v57, 1e-09 }
 0xc40   : > { %v1424_v0 = vsel %vm1423_vm8, %v1422_v57, 0.0 }
 0xc41   : > { %1583 = vperm.xlu1 %2375, %v1424_v0   ;;  %1588 = vperm.xlu0 %2374, %v1424_v0  }
 0xc42   : > { %2313 = vmatmul.mubr.msk.f32.vlgmr.msra.gmra.mrb[10].mxu1 %vm1411_vm6, %v1424_v0 }
 0xc43   : > { %2225 = vmatpush3.bf16.msra.mxu1 %v2404_v58 }
 0xc44   : > { %2226 = vmatprep.subr.bf16.mxu1 %v2407_v59 }
 0xc45   : > { %2376 = vset.pattern.permute.xlu1 %v2535_v1  ;;  %2378 = vset.pattern.permute.xlu0 %v2535_v1 }
 0xc46   : > { %1598 = vperm.xlu1 %2376, %v1424_v0  }
 0xc47   : > { %2227 = vmatpush3.bf16.msra.mxu1 %v2408_v62 }
 0xc48   : > { %2228 = vmatprep.subr.bf16.mxu1 %v2411_v63 }
 0xc4a   : > { %2377 = vset.pattern.permute.xlu1 %v2536_v4 }
 0xc4b   : > { %1593 = vperm.xlu1 %2377, %v1424_v0   ;;  %2229 = vmatpush3.bf16.msra.mxu1 %v2412_v2 }
 0xc4c   : > { %2230 = vmatprep.subr.bf16.mxu1 %v2415_v3 }
 0xc4f   : > { %2231 = vmatpush3.bf16.msra.mxu1 %v2416_v5 }
 0xc50   : > { %2232 = vmatprep.subr.bf16.mxu1 %v2419_v6 }
 0xc53   : > { %2233 = vmatpush3.bf16.msra.mxu1 %v2420_v7 }
 0xc54   : > { %2234 = vmatprep.subr.bf16.mxu1 %v2423_v9 }
 0xc57   : > { %2235 = vmatpush3.bf16.msra.mxu1 %v2424_v10 }
 0xc58   : > { %2236 = vmatprep.subr.bf16.mxu1 %v2425_v11 }
 0xc5b   : > { %2237 = vmatpush3.bf16.msra.mxu1 %v2426_v12 }
 0xc5c   : > { %2238 = vmatprep.subr.bf16.mxu1 %v2427_v13 }
 0xc5f   : > { %2239 = vmatpush3.bf16.msra.mxu1 %v2428_v14 }
 0xcc0   : > { %v1584_v32 = vpop.permute.xlu1 %1583  ;;  %v1589_v33 = vpop.permute.xlu0 %1588 }
 0xcc1   : > { %v1586_v35 = vmul.f32 %v1584_v32, %v1577_v8  ;;  %v1591_v36 = vmul.f32 %v1589_v33, %v1578_v30 }
 0xcc3   : > { %v1602_v37 = vpack.c.bf16 %v1586_v35, %v1586_v35  ;;  %v1603_v38 = vpack.c.bf16 %v1591_v36, %v1591_v36 }
 0xcc5   : > { %v1599_v19 = vpop.permute.xlu1 %1598  ;;  %1971 = vmatprep.mubr.bf16.mxu0 %v1603_v38 }
 0xcc6   : > { %v1601_v23 = vmul.f32 %v1599_v19, %v1580_v39  ;;  %1972 = vmatmul.mubr.bf16.vlgmr.msra.gmra.mrb[20].mxu0 %v1602_v37 }
 0xcc8   : > { %v1605_v27 = vpack.c.bf16 %v1601_v23, %v1601_v23 }
 0xcca   : > { %v1594_v42 = vpop.permute.xlu1 %1593  ;;  %2011 = vmatprep.mubr.bf16.mxu1 %v1605_v27 }
 0xccb   : > { %v1596_v29 = vmul.f32 %v1594_v42, %v1579_v41 }
 0xccd   : > { %v1604_v43 = vpack.c.bf16 %v1596_v29, %v1596_v29 }
 0xccf   : > { %2012 = vmatmul.mubr.bf16.vlgmr.msra.gmra.mrb[20].mxu1 %v1604_v43 }
 0xd15   : > { %v1743_v44 = vpop.f32.mrb[10].mxu1 }
 0xd16   : > { %v2314_v45 = vpop.f32.mrb[11].mxu1 }
 0xd99   : > { %v2218_v46 = vpop.f32.mrb[20].mxu0 }
 0xd9a   : > { %v2219_v47 = vpop.f32.mrb[21].mxu0 }
 0xd9b   : > { %v2220_v49 = vadd.f32 %v2219_v47, %v2218_v46  ;;  %v2221_v50 = vpop.f32.mrb[22].mxu0 }
 0xd9c   : > { %v2222_v28 = vpop.f32.mrb[23].mxu0 }
 0xd9d   : > { %v1974_v51 = vadd.f32 %v2220_v49, %v1743_v44 }
 0xda2   : > { %v2240_v53 = vpop.f32.mrb[20].mxu1 }
 0xda3   : > { %v2241_v48 = vpop.f32.mrb[21].mxu1 }
 0xda4   : > { %v2242_v54 = vadd.f32 %v2241_v48, %v2240_v53  ;;  %v2243_v55 = vpop.f32.mrb[22].mxu1 }
 0xda5   : > { %v2244_v56 = vpop.f32.mrb[23].mxu1 }
 0xda6   : > { %v2014_v57 = vadd.f32 %v2242_v54, %v1974_v51 }
 0xda8   : > { %v2019_v58 = vadd.f32 %v2014_v57, %v2787_v52 }
 0xdaa   : > { %2020 = vst.msk [vmem:[%s458_s20] sm:$0xff] %vm467_vm0, %v2019_v58 }
 0xdab   : > { %2466 = shalt.err (!%p2463_p3)
}
 0xdac   : > { %s2467_s28 = scalar_lea.hbm %s2966_s26, 128  ;;  %s2471_s25 = scalar_lea.hbm %s3023_s14, 256 }
 0xdad   : > { %p2468_p4 = scmp.ne.s32.totalorder %s2966_s26, %s2467_s28  ;;  %p2472_p9 = scmp.lt.u32.totalorder %s2966_s26, %s3023_s14 }
 0xdae   : > { %p2473_p10 = scmp.lt.u32.totalorder %s2471_s25, %s2467_s28  ;;  %p2475_p12 = scmp.lt.u32.totalorder %s2467_s28, %s2966_s26 }
 0xdaf   : > { %p2469_p7 = pnand %p2468_p4, %p2651_p5 }
 0xdb0   : > { %p2474_p11 = por %p2473_p10, %p2472_p9 }
 0xdb1   : > { %p2470_p8 = pneg %p2469_p7 }
 0xdb2   : > { %p2476_p13 = por %p2475_p12, %p2474_p11 }
 0xdb4   : > { %p2477_p0 = pnand %p2476_p13, %p2470_p8 }
 0xdb6   : > { %2480 = shalt.err (!%p2477_p0)
}
 0xdb7   : > { %2315 = dma.vmem_to_hbm [thread:$0]  (%p2651_p5), %s2968_s21, 128, %s2966_s26, %s2022_s1  }
 0xdb8 PF: > { %p2321_p1 = scmp.ge.s32.totalorder %s2515_s16, 2  ;;  %s2047_s3 = sand.u32 1, %s2503_s29  }
 0xdb9   : > { %s2048_s27 = scalar_lea.sflag [#allocation3], %s2047_s3 }
 0xdba   : > { %p2318_p2 = pnand %p2321_p1, %p2655_p6 }
 0xdbc   : > { %2498 = dma.done.wait (!%p2318_p2), %s2048_s27, 128  }
 0xdbd   : > { %2500 = vsyncadd (!%p2318_p2), %s2048_s27, 4294967168  ;;  %p24_p3 = scmp.ge.s32.totalorder %s2638_s19, 4   ;;  %s3034_s29 = smov %s2507_s30 }
 0xdbe   : > { %s3035_s30 = smov %s2511_s15  ;;  %s3036_s15 = smov %s2649_s22 }
 0xdbf   : > { %s3037_s16 = smov %s2638_s19  ;;  %26 = sbr.rel (!%p24_p3) target bundleno = 8 (0x8), region = 111 }
 0xdc6   :  { %2053 = vsyncpa [#allocation3], 1 }
 0xdc7   :  { %2055 = vsyncpa [#allocation3 + $0x1], 1 }

</bundles_post_ra>
